<compile_context>
chip_gen: v7x
topology: tpu7x:2x2x1
jax: 0.10.0
libtpu: 0.0.40
codegen_flags: <defaults>
</compile_context>

<pallas_src>
import functools

import jax
import jax.numpy as jnp
from jax import lax
from jax.experimental import pallas as pl
from jax.experimental.pallas import tpu as pltpu


# ----------------------------------------------------------------------------
# Polyphase bookkeeping.
#
# For output phase r (rows) / s (cols) of conv3x3(upsample2x(x)):
#   upsampled row 2i+r+dp-1 maps to original row i+du with
#     r=0: dp=0 -> du=-1 ; dp=1,2 -> du=0
#     r=1: dp=0,1 -> du=0 ; dp=2 -> du=+1
# (identically for columns with s, dq, dv).  Each phase therefore sees a 2x2
# tap footprint in the original image, and the 3x3 weights collapse onto it.
# ----------------------------------------------------------------------------
_TAPS = {0: (-1, 0), 1: (0, 1)}                        # phase -> (du or dv) taps
_SRC = {(0, -1): (0,), (0, 0): (1, 2),                 # (phase, tap) -> orig 3x3 idx
        (1, 0): (0, 1), (1, 1): (2,)}

# (du, dv) -> list of (phase index p = 2r+s, in-phase tap index t = 2ri+ci).
_USERS = {}
for _r in (0, 1):
    for _s in (0, 1):
        for _ri, _du in enumerate(_TAPS[_r]):
            for _ci, _dv in enumerate(_TAPS[_s]):
                _USERS.setdefault((_du, _dv), []).append((2 * _r + _s, 2 * _ri + _ci))


def _phase_weights(w):
    """w: (OC, C, 3, 3) f32 -> (4, 4, OC, C) effective per-phase 2x2-tap weights."""
    OC, C = w.shape[0], w.shape[1]
    phases = []
    for r in (0, 1):
        for s in (0, 1):
            taps = []
            for du in _TAPS[r]:
                for dv in _TAPS[s]:
                    acc = jnp.zeros((OC, C), w.dtype)
                    for dp in _SRC[(r, du)]:
                        for dq in _SRC[(s, dv)]:
                            acc = acc + w[:, :, dp, dq]
                    taps.append(acc)
            phases.append(jnp.stack(taps, axis=0))
    return jnp.stack(phases, axis=0)                   # (4, 4, OC, C)


def _pick_tile(n, target):
    """Largest divisor of n that is <= target and a multiple of 8 (fallback n)."""
    if n <= target:
        return n
    for t in range(target, 7, -1):
        if n % t == 0 and t % 8 == 0:
            return t
    return n


# ----------------------------------------------------------------------------
# use_conv=True kernel: polyphase upsample+conv, channels-first (C, H*W).
# ----------------------------------------------------------------------------
def _upsample_conv_kernel(x_ref, w_ref, b_ref, out_ref, *, C, H, W):
    """x_ref: (1, C, H*W) bf16; w_ref: (4, 4, OC_t, C) bf16; b_ref: (OC_t, 1) f32;
    out_ref: (1, 4, OC_t, H*W) out dtype."""
    HW = H * W
    x = x_ref[0]                                               # (C, HW)
    oc_t = w_ref.shape[2]

    # Column-validity masks for the +-1 horizontal taps; the +-1 row taps are
    # handled exactly by the zero fill of the flattened shift itself.
    j = lax.broadcasted_iota(jnp.int32, (1, HW), 1) % W
    col_ok = {-1: j > 0, 0: None, 1: j < (W - 1)}

    def shifted(du, dv):
        # shifted[ic, i*W + j] == x[ic, i+du, j+dv]  (zero outside the image)
        off = du * W + dv
        if off > 0:
            sh = jnp.concatenate([x[:, off:], jnp.zeros((C, off), x.dtype)], axis=1)
        elif off < 0:
            sh = jnp.concatenate([jnp.zeros((C, -off), x.dtype), x[:, :off]], axis=1)
        else:
            sh = x
        if col_ok[dv] is not None:
            sh = jnp.where(col_ok[dv], sh, jnp.zeros_like(sh))
        return sh

    acc = [jnp.zeros((oc_t, HW), jnp.float32) for _ in range(4)]
    # Shift-outer loop: one shifted activation live at a time, 16 MXU matmuls
    # total (true polyphase FLOP count).
    for du in (-1, 0, 1):
        for dv in (-1, 0, 1):
            sh = shifted(du, dv)                               # (C, HW)
            for p, t in _USERS[(du, dv)]:
                acc[p] = acc[p] + jnp.dot(w_ref[p, t], sh,
                                          preferred_element_type=jnp.float32)

    b = b_ref[...]                                             # (OC_t, 1) f32
    for p in range(4):
        out_ref[0, p] = (acc[p] + b).astype(out_ref.dtype)


# ----------------------------------------------------------------------------
# use_conv=False kernel: memory-bound nearest 2x duplication.
# ----------------------------------------------------------------------------
def _upsample_nearest_kernel(x_ref, d_ref, out_ref):
    """x_ref: (1, rows, W); d_ref: (W, 2W) one-hot; out_ref: (1, 2, rows, 2W)."""
    xw = jnp.dot(x_ref[0], d_ref[...],
                 preferred_element_type=jnp.float32).astype(out_ref.dtype)
    out_ref[0, 0] = xw          # even output rows
    out_ref[0, 1] = xw          # odd output rows (height dup = double store)


# ----------------------------------------------------------------------------
# Wrappers.
# ----------------------------------------------------------------------------
def _upsample_nearest(x):
    N, C, H, W = x.shape
    rows = C * H
    rt = _pick_tile(rows, 2048)
    x2 = x.reshape(N, rows, W)

    # Resident one-hot width-duplication matrix: (x @ D)[:, 2j+s] == x[:, j].
    src = jnp.arange(W)[:, None]
    dst = jnp.arange(2 * W)[None, :] // 2
    dmat = (src == dst).astype(x.dtype)

    out = pl.pallas_call(
        _upsample_nearest_kernel,
        out_shape=jax.ShapeDtypeStruct((N, 2, rows, 2 * W), x.dtype),
        grid=(N, rows // rt),
        in_specs=[
            pl.BlockSpec((1, rt, W), lambda n, rb: (n, rb, 0)),
            pl.BlockSpec((W, 2 * W), lambda n, rb: (0, 0)),
        ],
        out_specs=pl.BlockSpec((1, 2, rt, 2 * W), lambda n, rb: (n, 0, rb, 0)),
        compiler_params=pltpu.CompilerParams(
            dimension_semantics=("parallel", "parallel")),
        cost_estimate=pl.CostEstimate(
            flops=2 * x2.size * 2 * W, transcendentals=0,
            bytes_accessed=5 * x2.size * x2.dtype.itemsize),
    )(x2, dmat)

    # (N, r, C, H, 2W) -> (N, C, H, r, 2W) -> (N, C, 2H, 2W)   (layout plumbing)
    y = out.reshape(N, 2, C, H, 2 * W)
    y = jnp.transpose(y, (0, 2, 3, 1, 4))
    return y.reshape(N, C, 2 * H, 2 * W)


def upsample_forward(x, weight=None, bias=None, *, compute_dtype=jnp.bfloat16):
    """diffunet Upsample.forward (dims=2).

    x:      (N, C, H, W)
    weight: optional (C_out, C, 3, 3) conv weight (use_conv=True)
    bias:   optional (C_out,) conv bias
    returns (N, C_out if use_conv else C, 2H, 2W)
    """
    N, C, H, W = x.shape
    if weight is None:
        return _upsample_nearest(x)

    OC = weight.shape[0]
    assert weight.shape == (OC, C, 3, 3)
    HW = H * W
    oc_t = _pick_tile(OC, 256)

    x2 = x.reshape(N, C, HW).astype(compute_dtype)
    wp = _phase_weights(weight.astype(jnp.float32)).astype(compute_dtype)  # (4,4,OC,C)
    b2 = (jnp.zeros((OC, 1), jnp.float32) if bias is None
          else bias.astype(jnp.float32).reshape(OC, 1))

    kern = functools.partial(_upsample_conv_kernel, C=C, H=H, W=W)
    flops = 2 * N * 16 * OC * C * HW
    bytes_accessed = (x2.size * x2.dtype.itemsize + wp.size * wp.dtype.itemsize
                      + N * 4 * OC * HW * x.dtype.itemsize)

    out = pl.pallas_call(
        kern,
        out_shape=jax.ShapeDtypeStruct((N, 4, OC, HW), x.dtype),
        grid=(N, OC // oc_t),
        in_specs=[
            pl.BlockSpec((1, C, HW), lambda n, o: (n, 0, 0)),        # resident over o
            pl.BlockSpec((4, 4, oc_t, C), lambda n, o: (0, 0, o, 0)),
            pl.BlockSpec((oc_t, 1), lambda n, o: (o, 0)),
        ],
        out_specs=pl.BlockSpec((1, 4, oc_t, HW), lambda n, o: (n, 0, o, 0)),
        compiler_params=pltpu.CompilerParams(
            dimension_semantics=("parallel", "parallel")),
        cost_estimate=pl.CostEstimate(flops=flops, transcendentals=0,
                                      bytes_accessed=bytes_accessed),
    )(x2, wp, b2)

    # Pixel shuffle (wrapper-side): (N, r, s, OC, H, W) -> (N, OC, 2H, 2W).
    y = out.reshape(N, 2, 2, OC, H, W)
    y = jnp.transpose(y, (0, 3, 4, 1, 5, 2))
    return y.reshape(N, OC, 2 * H, 2 * W)


# ----------------------------------------------------------------------------
# Pure-JAX reference (transcription of the PyTorch forward) for verification.
# ----------------------------------------------------------------------------
def _reference(x, weight=None, bias=None):
    xu = jnp.repeat(jnp.repeat(x, 2, axis=-2), 2, axis=-1)     # nearest, scale 2
    if weight is None:
        return xu
    y = lax.conv_general_dilated(
        xu, weight, window_strides=(1, 1), padding=((1, 1), (1, 1)),
        dimension_numbers=("NCHW", "OIHW", "NCHW"),
        precision=lax.Precision.HIGHEST)
    if bias is not None:
        y = y + bias[None, :, None, None]
    return y


if __name__ == "__main__":
    N, C, H, W = 2, 4, 16, 16
    OC = C

    key = jax.random.PRNGKey(0)
    kx, kw, kb = jax.random.split(key, 3)
    # x is quantized to bf16-representable values (exact bf16 activation cast);
    # weights/bias are small dyadic rationals so the per-phase tap sums remain
    # exactly representable in bf16 -> the bf16 MXU path can be checked to a
    # tight tolerance (remaining error is only f32 accumulation order).
    x = jax.random.normal(kx, (N, C, H, W), dtype=jnp.float32)
    x = x.astype(jnp.bfloat16).astype(jnp.float32)
    weight = jax.random.randint(kw, (OC, C, 3, 3), -8, 9).astype(jnp.float32) / 64.0
    bias = jax.random.randint(kb, (OC,), -8, 9).astype(jnp.float32) / 64.0

    # use_conv=True path (upsample + 3x3 conv, the full forward).
    y = jax.block_until_ready(upsample_forward(x, weight, bias))
    y_ref = _reference(x, weight, bias)
    assert y.shape == (N, OC, 2 * H, 2 * W)
    err = float(jnp.max(jnp.abs(y - y_ref)))
    assert err < 1e-3, f"conv path mismatch: max abs err = {err}"

    # use_conv=False path (pure nearest upsample; exact duplication).
    y2 = jax.block_until_ready(upsample_forward(x))
    y2_ref = _reference(x)
    assert y2.shape == (N, C, 2 * H, 2 * W)
    err2 = float(jnp.max(jnp.abs(y2 - y2_ref)))
    assert err2 < 1e-6, f"upsample path mismatch: max abs err = {err2}"

    print("KERNEL_OK")
</pallas_src>

<mosaic_0001>
module attributes {stable_mosaic.version = 11 : i64} {
  func.func @_upsample_conv_kernel(%arg0: i32, %arg1: i32, %arg2: memref<1x4x256xbf16, #tpu.memory_space<vmem>>, %arg3: memref<4x4x4x4xbf16, #tpu.memory_space<vmem>>, %arg4: memref<4x1xf32, #tpu.memory_space<vmem>>, %arg5: memref<1x4x4x256xf32, #tpu.memory_space<vmem>>) attributes {dimension_semantics = [#tpu.dimension_semantics<parallel>, #tpu.dimension_semantics<parallel>], iteration_bounds = array<i64: 2, 1>, scalar_prefetch = 0 : i64, scratch_operands = 0 : i64, tpu.core_type = #tpu.core_type<tc>, window_params = [{transform_indices = @transform_0, window_bounds = array<i64: 1, 4, 256>}, {transform_indices = @transform_1, window_bounds = array<i64: 4, 4, 4, 4>}, {transform_indices = @transform_2, window_bounds = array<i64: 4, 1>}, {transform_indices = @transform_3, window_bounds = array<i64: 1, 4, 4, 256>}]} {
    %c0 = arith.constant 0 : index
    %c0_0 = arith.constant 0 : index
    %c0_1 = arith.constant 0 : index
    %0 = vector.load %arg2[%c0, %c0_0, %c0_1] : memref<1x4x256xbf16, #tpu.memory_space<vmem>>, vector<1x4x256xbf16>
    %1 = vector.shape_cast %0 : vector<1x4x256xbf16> to vector<4x256xbf16>
    %2 = tpu.iota {dimensions = array<i32: 1>} : vector<1x256xi32>
    %c16_i32 = arith.constant 16 : i32
    %c0_i32 = arith.constant 0 : i32
    %3 = arith.cmpi eq, %c16_i32, %c0_i32 : i32
    %c1_i32 = arith.constant 1 : i32
    %4 = arith.select %3, %c1_i32, %c16_i32 : i32
    %5 = vector.broadcast %4 : i32 to vector<1x256xi32>
    %6 = arith.remsi %2, %5 : vector<1x256xi32>
    %c0_i32_2 = arith.constant 0 : i32
    %7 = vector.broadcast %c0_i32_2 : i32 to vector<1x256xi32>
    %8 = arith.cmpi ne, %6, %7 : vector<1x256xi32>
    %c0_i32_3 = arith.constant 0 : i32
    %9 = vector.broadcast %c0_i32_3 : i32 to vector<1x256xi32>
    %10 = arith.cmpi slt, %6, %9 : vector<1x256xi32>
    %c0_i32_4 = arith.constant 0 : i32
    %11 = arith.cmpi slt, %4, %c0_i32_4 : i32
    %12 = vector.broadcast %11 : i1 to vector<1x256xi1>
    %13 = vector.broadcast %12 : vector<1x256xi1> to vector<1x256xi1>
    %14 = arith.xori %10, %13 : vector<1x256xi1>
    %15 = arith.andi %14, %8 : vector<1x256xi1>
    %16 = vector.broadcast %4 : i32 to vector<1x256xi32>
    %17 = arith.addi %6, %16 : vector<1x256xi32>
    %18 = arith.select %15, %17, %6 : vector<1x256xi1>, vector<1x256xi32>
    %c0_i32_5 = arith.constant 0 : i32
    %19 = vector.broadcast %c0_i32_5 : i32 to vector<1x256xi32>
    %20 = arith.cmpi sgt, %18, %19 : vector<1x256xi32>
    %c15_i32 = arith.constant 15 : i32
    %21 = vector.broadcast %c15_i32 : i32 to vector<1x256xi32>
    %22 = arith.cmpi slt, %18, %21 : vector<1x256xi32>
    %cst = arith.constant 0.000000e+00 : f32
    %23 = vector.broadcast %cst : f32 to vector<4x256xf32>
    %cst_6 = arith.constant 0.000000e+00 : f32
    %24 = vector.broadcast %cst_6 : f32 to vector<4x256xf32>
    %cst_7 = arith.constant 0.000000e+00 : f32
    %25 = vector.broadcast %cst_7 : f32 to vector<4x256xf32>
    %cst_8 = arith.constant 0.000000e+00 : f32
    %26 = vector.broadcast %cst_8 : f32 to vector<4x256xf32>
    %cst_9 = arith.constant 0.000000e+00 : bf16
    %27 = vector.broadcast %cst_9 : bf16 to vector<4x17xbf16>
    %28 = vector.extract_strided_slice %1 {offsets = [0, 0], sizes = [4, 239], strides = [1, 1]} : vector<4x256xbf16> to vector<4x239xbf16>
    %29 = tpu.concatenate %27, %28 in 1 : vector<4x17xbf16>, vector<4x239xbf16> -> vector<4x256xbf16>
    %cst_10 = arith.constant 0.000000e+00 : bf16
    %30 = vector.broadcast %cst_10 : bf16 to vector<4x256xbf16>
    %31 = vector.shape_cast %20 : vector<1x256xi1> to vector<1x256xi1>
    %32 = vector.broadcast %31 : vector<1x256xi1> to vector<4x256xi1>
    %33 = arith.select %32, %29, %30 : vector<4x256xi1>, vector<4x256xbf16>
    %c0_11 = arith.constant 0 : index
    %c0_12 = arith.constant 0 : index
    %c0_13 = arith.constant 0 : index
    %c0_14 = arith.constant 0 : index
    %34 = vector.load %arg3[%c0_11, %c0_12, %c0_13, %c0_14] : memref<4x4x4x4xbf16, #tpu.memory_space<vmem>>, vector<1x1x4x4xbf16>
    %35 = vector.shape_cast %34 : vector<1x1x4x4xbf16> to vector<4x4xbf16>
    %cst_15 = arith.constant dense<0.000000e+00> : vector<4x256xf32>
    %36 = tpu.matmul %35, %33, %cst_15 {dimension_numbers = #tpu.dot_dimension_numbers<[1], [0], [0], [1], [0, 0, 1, 1], [], []>} : vector<4x4xbf16>, vector<4x256xbf16>, vector<4x256xf32> -> vector<4x256xf32>
    %37 = arith.addf %23, %36 : vector<4x256xf32>
    %cst_16 = arith.constant 0.000000e+00 : bf16
    %38 = vector.broadcast %cst_16 : bf16 to vector<4x16xbf16>
    %39 = vector.extract_strided_slice %1 {offsets = [0, 0], sizes = [4, 240], strides = [1, 1]} : vector<4x256xbf16> to vector<4x240xbf16>
    %40 = tpu.concatenate %38, %39 in 1 : vector<4x16xbf16>, vector<4x240xbf16> -> vector<4x256xbf16>
    %c0_17 = arith.constant 0 : index
    %c1 = arith.constant 1 : index
    %c0_18 = arith.constant 0 : index
    %c0_19 = arith.constant 0 : index
    %41 = vector.load %arg3[%c0_17, %c1, %c0_18, %c0_19] : memref<4x4x4x4xbf16, #tpu.memory_space<vmem>>, vector<1x1x4x4xbf16>
    %42 = vector.shape_cast %41 : vector<1x1x4x4xbf16> to vector<4x4xbf16>
    %cst_20 = arith.constant dense<0.000000e+00> : vector<4x256xf32>
    %43 = tpu.matmul %42, %40, %cst_20 {dimension_numbers = #tpu.dot_dimension_numbers<[1], [0], [0], [1], [0, 0, 1, 1], [], []>} : vector<4x4xbf16>, vector<4x256xbf16>, vector<4x256xf32> -> vector<4x256xf32>
    %44 = arith.addf %37, %43 : vector<4x256xf32>
    %c1_21 = arith.constant 1 : index
    %c0_22 = arith.constant 0 : index
    %c0_23 = arith.constant 0 : index
    %c0_24 = arith.constant 0 : index
    %45 = vector.load %arg3[%c1_21, %c0_22, %c0_23, %c0_24] : memref<4x4x4x4xbf16, #tpu.memory_space<vmem>>, vector<1x1x4x4xbf16>
    %46 = vector.shape_cast %45 : vector<1x1x4x4xbf16> to vector<4x4xbf16>
    %cst_25 = arith.constant dense<0.000000e+00> : vector<4x256xf32>
    %47 = tpu.matmul %46, %40, %cst_25 {dimension_numbers = #tpu.dot_dimension_numbers<[1], [0], [0], [1], [0, 0, 1, 1], [], []>} : vector<4x4xbf16>, vector<4x256xbf16>, vector<4x256xf32> -> vector<4x256xf32>
    %48 = arith.addf %24, %47 : vector<4x256xf32>
    %cst_26 = arith.constant 0.000000e+00 : bf16
    %49 = vector.broadcast %cst_26 : bf16 to vector<4x15xbf16>
    %50 = vector.extract_strided_slice %1 {offsets = [0, 0], sizes = [4, 241], strides = [1, 1]} : vector<4x256xbf16> to vector<4x241xbf16>
    %51 = tpu.concatenate %49, %50 in 1 : vector<4x15xbf16>, vector<4x241xbf16> -> vector<4x256xbf16>
    %cst_27 = arith.constant 0.000000e+00 : bf16
    %52 = vector.broadcast %cst_27 : bf16 to vector<4x256xbf16>
    %53 = vector.shape_cast %22 : vector<1x256xi1> to vector<1x256xi1>
    %54 = vector.broadcast %53 : vector<1x256xi1> to vector<4x256xi1>
    %55 = arith.select %54, %51, %52 : vector<4x256xi1>, vector<4x256xbf16>
    %c1_28 = arith.constant 1 : index
    %c1_29 = arith.constant 1 : index
    %c0_30 = arith.constant 0 : index
    %c0_31 = arith.constant 0 : index
    %56 = vector.load %arg3[%c1_28, %c1_29, %c0_30, %c0_31] : memref<4x4x4x4xbf16, #tpu.memory_space<vmem>>, vector<1x1x4x4xbf16>
    %57 = vector.shape_cast %56 : vector<1x1x4x4xbf16> to vector<4x4xbf16>
    %cst_32 = arith.constant dense<0.000000e+00> : vector<4x256xf32>
    %58 = tpu.matmul %57, %55, %cst_32 {dimension_numbers = #tpu.dot_dimension_numbers<[1], [0], [0], [1], [0, 0, 1, 1], [], []>} : vector<4x4xbf16>, vector<4x256xbf16>, vector<4x256xf32> -> vector<4x256xf32>
    %59 = arith.addf %48, %58 : vector<4x256xf32>
    %cst_33 = arith.constant 0.000000e+00 : bf16
    %60 = vector.broadcast %cst_33 : bf16 to vector<4x1xbf16>
    %61 = vector.extract_strided_slice %1 {offsets = [0, 0], sizes = [4, 255], strides = [1, 1]} : vector<4x256xbf16> to vector<4x255xbf16>
    %62 = tpu.concatenate %60, %61 in 1 : vector<4x1xbf16>, vector<4x255xbf16> -> vector<4x256xbf16>
    %cst_34 = arith.constant 0.000000e+00 : bf16
    %63 = vector.broadcast %cst_34 : bf16 to vector<4x256xbf16>
    %64 = vector.shape_cast %20 : vector<1x256xi1> to vector<1x256xi1>
    %65 = vector.broadcast %64 : vector<1x256xi1> to vector<4x256xi1>
    %66 = arith.select %65, %62, %63 : vector<4x256xi1>, vector<4x256xbf16>
    %c0_35 = arith.constant 0 : index
    %c2 = arith.constant 2 : index
    %c0_36 = arith.constant 0 : index
    %c0_37 = arith.constant 0 : index
    %67 = vector.load %arg3[%c0_35, %c2, %c0_36, %c0_37] : memref<4x4x4x4xbf16, #tpu.memory_space<vmem>>, vector<1x1x4x4xbf16>
    %68 = vector.shape_cast %67 : vector<1x1x4x4xbf16> to vector<4x4xbf16>
    %cst_38 = arith.constant dense<0.000000e+00> : vector<4x256xf32>
    %69 = tpu.matmul %68, %66, %cst_38 {dimension_numbers = #tpu.dot_dimension_numbers<[1], [0], [0], [1], [0, 0, 1, 1], [], []>} : vector<4x4xbf16>, vector<4x256xbf16>, vector<4x256xf32> -> vector<4x256xf32>
    %70 = arith.addf %44, %69 : vector<4x256xf32>
    %c2_39 = arith.constant 2 : index
    %c0_40 = arith.constant 0 : index
    %c0_41 = arith.constant 0 : index
    %c0_42 = arith.constant 0 : index
    %71 = vector.load %arg3[%c2_39, %c0_40, %c0_41, %c0_42] : memref<4x4x4x4xbf16, #tpu.memory_space<vmem>>, vector<1x1x4x4xbf16>
    %72 = vector.shape_cast %71 : vector<1x1x4x4xbf16> to vector<4x4xbf16>
    %cst_43 = arith.constant dense<0.000000e+00> : vector<4x256xf32>
    %73 = tpu.matmul %72, %66, %cst_43 {dimension_numbers = #tpu.dot_dimension_numbers<[1], [0], [0], [1], [0, 0, 1, 1], [], []>} : vector<4x4xbf16>, vector<4x256xbf16>, vector<4x256xf32> -> vector<4x256xf32>
    %74 = arith.addf %25, %73 : vector<4x256xf32>
    %c0_44 = arith.constant 0 : index
    %c3 = arith.constant 3 : index
    %c0_45 = arith.constant 0 : index
    %c0_46 = arith.constant 0 : index
    %75 = vector.load %arg3[%c0_44, %c3, %c0_45, %c0_46] : memref<4x4x4x4xbf16, #tpu.memory_space<vmem>>, vector<1x1x4x4xbf16>
    %76 = vector.shape_cast %75 : vector<1x1x4x4xbf16> to vector<4x4xbf16>
    %cst_47 = arith.constant dense<0.000000e+00> : vector<4x256xf32>
    %77 = tpu.matmul %76, %1, %cst_47 {dimension_numbers = #tpu.dot_dimension_numbers<[1], [0], [0], [1], [0, 0, 1, 1], [], []>} : vector<4x4xbf16>, vector<4x256xbf16>, vector<4x256xf32> -> vector<4x256xf32>
    %78 = arith.addf %70, %77 : vector<4x256xf32>
    %c1_48 = arith.constant 1 : index
    %c2_49 = arith.constant 2 : index
    %c0_50 = arith.constant 0 : index
    %c0_51 = arith.constant 0 : index
    %79 = vector.load %arg3[%c1_48, %c2_49, %c0_50, %c0_51] : memref<4x4x4x4xbf16, #tpu.memory_space<vmem>>, vector<1x1x4x4xbf16>
    %80 = vector.shape_cast %79 : vector<1x1x4x4xbf16> to vector<4x4xbf16>
    %cst_52 = arith.constant dense<0.000000e+00> : vector<4x256xf32>
    %81 = tpu.matmul %80, %1, %cst_52 {dimension_numbers = #tpu.dot_dimension_numbers<[1], [0], [0], [1], [0, 0, 1, 1], [], []>} : vector<4x4xbf16>, vector<4x256xbf16>, vector<4x256xf32> -> vector<4x256xf32>
    %82 = arith.addf %59, %81 : vector<4x256xf32>
    %c2_53 = arith.constant 2 : index
    %c1_54 = arith.constant 1 : index
    %c0_55 = arith.constant 0 : index
    %c0_56 = arith.constant 0 : index
    %83 = vector.load %arg3[%c2_53, %c1_54, %c0_55, %c0_56] : memref<4x4x4x4xbf16, #tpu.memory_space<vmem>>, vector<1x1x4x4xbf16>
    %84 = vector.shape_cast %83 : vector<1x1x4x4xbf16> to vector<4x4xbf16>
    %cst_57 = arith.constant dense<0.000000e+00> : vector<4x256xf32>
    %85 = tpu.matmul %84, %1, %cst_57 {dimension_numbers = #tpu.dot_dimension_numbers<[1], [0], [0], [1], [0, 0, 1, 1], [], []>} : vector<4x4xbf16>, vector<4x256xbf16>, vector<4x256xf32> -> vector<4x256xf32>
    %86 = arith.addf %74, %85 : vector<4x256xf32>
    %c3_58 = arith.constant 3 : index
    %c0_59 = arith.constant 0 : index
    %c0_60 = arith.constant 0 : index
    %c0_61 = arith.constant 0 : index
    %87 = vector.load %arg3[%c3_58, %c0_59, %c0_60, %c0_61] : memref<4x4x4x4xbf16, #tpu.memory_space<vmem>>, vector<1x1x4x4xbf16>
    %88 = vector.shape_cast %87 : vector<1x1x4x4xbf16> to vector<4x4xbf16>
    %cst_62 = arith.constant dense<0.000000e+00> : vector<4x256xf32>
    %89 = tpu.matmul %88, %1, %cst_62 {dimension_numbers = #tpu.dot_dimension_numbers<[1], [0], [0], [1], [0, 0, 1, 1], [], []>} : vector<4x4xbf16>, vector<4x256xbf16>, vector<4x256xf32> -> vector<4x256xf32>
    %90 = arith.addf %26, %89 : vector<4x256xf32>
    %91 = vector.extract_strided_slice %1 {offsets = [0, 1], sizes = [4, 255], strides = [1, 1]} : vector<4x256xbf16> to vector<4x255xbf16>
    %cst_63 = arith.constant 0.000000e+00 : bf16
    %92 = vector.broadcast %cst_63 : bf16 to vector<4x1xbf16>
    %93 = tpu.concatenate %91, %92 in 1 : vector<4x255xbf16>, vector<4x1xbf16> -> vector<4x256xbf16>
    %cst_64 = arith.constant 0.000000e+00 : bf16
    %94 = vector.broadcast %cst_64 : bf16 to vector<4x256xbf16>
    %95 = vector.shape_cast %22 : vector<1x256xi1> to vector<1x256xi1>
    %96 = vector.broadcast %95 : vector<1x256xi1> to vector<4x256xi1>
    %97 = arith.select %96, %93, %94 : vector<4x256xi1>, vector<4x256xbf16>
    %c1_65 = arith.constant 1 : index
    %c3_66 = arith.constant 3 : index
    %c0_67 = arith.constant 0 : index
    %c0_68 = arith.constant 0 : index
    %98 = vector.load %arg3[%c1_65, %c3_66, %c0_67, %c0_68] : memref<4x4x4x4xbf16, #tpu.memory_space<vmem>>, vector<1x1x4x4xbf16>
    %99 = vector.shape_cast %98 : vector<1x1x4x4xbf16> to vector<4x4xbf16>
    %cst_69 = arith.constant dense<0.000000e+00> : vector<4x256xf32>
    %100 = tpu.matmul %99, %97, %cst_69 {dimension_numbers = #tpu.dot_dimension_numbers<[1], [0], [0], [1], [0, 0, 1, 1], [], []>} : vector<4x4xbf16>, vector<4x256xbf16>, vector<4x256xf32> -> vector<4x256xf32>
    %101 = arith.addf %82, %100 : vector<4x256xf32>
    %c3_70 = arith.constant 3 : index
    %c1_71 = arith.constant 1 : index
    %c0_72 = arith.constant 0 : index
    %c0_73 = arith.constant 0 : index
    %102 = vector.load %arg3[%c3_70, %c1_71, %c0_72, %c0_73] : memref<4x4x4x4xbf16, #tpu.memory_space<vmem>>, vector<1x1x4x4xbf16>
    %103 = vector.shape_cast %102 : vector<1x1x4x4xbf16> to vector<4x4xbf16>
    %cst_74 = arith.constant dense<0.000000e+00> : vector<4x256xf32>
    %104 = tpu.matmul %103, %97, %cst_74 {dimension_numbers = #tpu.dot_dimension_numbers<[1], [0], [0], [1], [0, 0, 1, 1], [], []>} : vector<4x4xbf16>, vector<4x256xbf16>, vector<4x256xf32> -> vector<4x256xf32>
    %105 = arith.addf %90, %104 : vector<4x256xf32>
    %106 = vector.extract_strided_slice %1 {offsets = [0, 15], sizes = [4, 241], strides = [1, 1]} : vector<4x256xbf16> to vector<4x241xbf16>
    %cst_75 = arith.constant 0.000000e+00 : bf16
    %107 = vector.broadcast %cst_75 : bf16 to vector<4x15xbf16>
    %108 = tpu.concatenate %106, %107 in 1 : vector<4x241xbf16>, vector<4x15xbf16> -> vector<4x256xbf16>
    %cst_76 = arith.constant 0.000000e+00 : bf16
    %109 = vector.broadcast %cst_76 : bf16 to vector<4x256xbf16>
    %110 = vector.shape_cast %20 : vector<1x256xi1> to vector<1x256xi1>
    %111 = vector.broadcast %110 : vector<1x256xi1> to vector<4x256xi1>
    %112 = arith.select %111, %108, %109 : vector<4x256xi1>, vector<4x256xbf16>
    %c2_77 = arith.constant 2 : index
    %c2_78 = arith.constant 2 : index
    %c0_79 = arith.constant 0 : index
    %c0_80 = arith.constant 0 : index
    %113 = vector.load %arg3[%c2_77, %c2_78, %c0_79, %c0_80] : memref<4x4x4x4xbf16, #tpu.memory_space<vmem>>, vector<1x1x4x4xbf16>
    %114 = vector.shape_cast %113 : vector<1x1x4x4xbf16> to vector<4x4xbf16>
    %cst_81 = arith.constant dense<0.000000e+00> : vector<4x256xf32>
    %115 = tpu.matmul %114, %112, %cst_81 {dimension_numbers = #tpu.dot_dimension_numbers<[1], [0], [0], [1], [0, 0, 1, 1], [], []>} : vector<4x4xbf16>, vector<4x256xbf16>, vector<4x256xf32> -> vector<4x256xf32>
    %116 = arith.addf %86, %115 : vector<4x256xf32>
    %117 = vector.extract_strided_slice %1 {offsets = [0, 16], sizes = [4, 240], strides = [1, 1]} : vector<4x256xbf16> to vector<4x240xbf16>
    %cst_82 = arith.constant 0.000000e+00 : bf16
    %118 = vector.broadcast %cst_82 : bf16 to vector<4x16xbf16>
    %119 = tpu.concatenate %117, %118 in 1 : vector<4x240xbf16>, vector<4x16xbf16> -> vector<4x256xbf16>
    %c2_83 = arith.constant 2 : index
    %c3_84 = arith.constant 3 : index
    %c0_85 = arith.constant 0 : index
    %c0_86 = arith.constant 0 : index
    %120 = vector.load %arg3[%c2_83, %c3_84, %c0_85, %c0_86] : memref<4x4x4x4xbf16, #tpu.memory_space<vmem>>, vector<1x1x4x4xbf16>
    %121 = vector.shape_cast %120 : vector<1x1x4x4xbf16> to vector<4x4xbf16>
    %cst_87 = arith.constant dense<0.000000e+00> : vector<4x256xf32>
    %122 = tpu.matmul %121, %119, %cst_87 {dimension_numbers = #tpu.dot_dimension_numbers<[1], [0], [0], [1], [0, 0, 1, 1], [], []>} : vector<4x4xbf16>, vector<4x256xbf16>, vector<4x256xf32> -> vector<4x256xf32>
    %123 = arith.addf %116, %122 : vector<4x256xf32>
    %c3_88 = arith.constant 3 : index
    %c2_89 = arith.constant 2 : index
    %c0_90 = arith.constant 0 : index
    %c0_91 = arith.constant 0 : index
    %124 = vector.load %arg3[%c3_88, %c2_89, %c0_90, %c0_91] : memref<4x4x4x4xbf16, #tpu.memory_space<vmem>>, vector<1x1x4x4xbf16>
    %125 = vector.shape_cast %124 : vector<1x1x4x4xbf16> to vector<4x4xbf16>
    %cst_92 = arith.constant dense<0.000000e+00> : vector<4x256xf32>
    %126 = tpu.matmul %125, %119, %cst_92 {dimension_numbers = #tpu.dot_dimension_numbers<[1], [0], [0], [1], [0, 0, 1, 1], [], []>} : vector<4x4xbf16>, vector<4x256xbf16>, vector<4x256xf32> -> vector<4x256xf32>
    %127 = arith.addf %105, %126 : vector<4x256xf32>
    %128 = vector.extract_strided_slice %1 {offsets = [0, 17], sizes = [4, 239], strides = [1, 1]} : vector<4x256xbf16> to vector<4x239xbf16>
    %cst_93 = arith.constant 0.000000e+00 : bf16
    %129 = vector.broadcast %cst_93 : bf16 to vector<4x17xbf16>
    %130 = tpu.concatenate %128, %129 in 1 : vector<4x239xbf16>, vector<4x17xbf16> -> vector<4x256xbf16>
    %cst_94 = arith.constant 0.000000e+00 : bf16
    %131 = vector.broadcast %cst_94 : bf16 to vector<4x256xbf16>
    %132 = vector.shape_cast %22 : vector<1x256xi1> to vector<1x256xi1>
    %133 = vector.broadcast %132 : vector<1x256xi1> to vector<4x256xi1>
    %134 = arith.select %133, %130, %131 : vector<4x256xi1>, vector<4x256xbf16>
    %c3_95 = arith.constant 3 : index
    %c3_96 = arith.constant 3 : index
    %c0_97 = arith.constant 0 : index
    %c0_98 = arith.constant 0 : index
    %135 = vector.load %arg3[%c3_95, %c3_96, %c0_97, %c0_98] : memref<4x4x4x4xbf16, #tpu.memory_space<vmem>>, vector<1x1x4x4xbf16>
    %136 = vector.shape_cast %135 : vector<1x1x4x4xbf16> to vector<4x4xbf16>
    %cst_99 = arith.constant dense<0.000000e+00> : vector<4x256xf32>
    %137 = tpu.matmul %136, %134, %cst_99 {dimension_numbers = #tpu.dot_dimension_numbers<[1], [0], [0], [1], [0, 0, 1, 1], [], []>} : vector<4x4xbf16>, vector<4x256xbf16>, vector<4x256xf32> -> vector<4x256xf32>
    %138 = arith.addf %127, %137 : vector<4x256xf32>
    %c0_100 = arith.constant 0 : index
    %c0_101 = arith.constant 0 : index
    %139 = vector.load %arg4[%c0_100, %c0_101] : memref<4x1xf32, #tpu.memory_space<vmem>>, vector<4x1xf32>
    %140 = vector.broadcast %139 : vector<4x1xf32> to vector<4x256xf32>
    %141 = arith.addf %78, %140 : vector<4x256xf32>
    %c0_102 = arith.constant 0 : index
    %c0_103 = arith.constant 0 : index
    %c0_104 = arith.constant 0 : index
    %c0_105 = arith.constant 0 : index
    %142 = vector.load %arg5[%c0_102, %c0_103, %c0_104, %c0_105] : memref<1x4x4x256xf32, #tpu.memory_space<vmem>>, vector<1x1x4x256xf32>
    %143 = vector.shape_cast %142 : vector<1x1x4x256xf32> to vector<4x256xf32>
    %144 = vector.shape_cast %141 : vector<4x256xf32> to vector<1x1x4x256xf32>
    tpu.vector_store %arg5[%c0_102, %c0_103, %c0_104, %c0_105], %144 {strides = array<i32>} : memref<1x4x4x256xf32, #tpu.memory_space<vmem>>, vector<1x1x4x256xf32>,
    %145 = vector.broadcast %139 : vector<4x1xf32> to vector<4x256xf32>
    %146 = arith.addf %101, %145 : vector<4x256xf32>
    %c0_106 = arith.constant 0 : index
    %c1_107 = arith.constant 1 : index
    %c0_108 = arith.constant 0 : index
    %c0_109 = arith.constant 0 : index
    %147 = vector.load %arg5[%c0_106, %c1_107, %c0_108, %c0_109] : memref<1x4x4x256xf32, #tpu.memory_space<vmem>>, vector<1x1x4x256xf32>
    %148 = vector.shape_cast %147 : vector<1x1x4x256xf32> to vector<4x256xf32>
    %149 = vector.shape_cast %146 : vector<4x256xf32> to vector<1x1x4x256xf32>
    tpu.vector_store %arg5[%c0_106, %c1_107, %c0_108, %c0_109], %149 {strides = array<i32>} : memref<1x4x4x256xf32, #tpu.memory_space<vmem>>, vector<1x1x4x256xf32>,
    %150 = vector.broadcast %139 : vector<4x1xf32> to vector<4x256xf32>
    %151 = arith.addf %123, %150 : vector<4x256xf32>
    %c0_110 = arith.constant 0 : index
    %c2_111 = arith.constant 2 : index
    %c0_112 = arith.constant 0 : index
    %c0_113 = arith.constant 0 : index
    %152 = vector.load %arg5[%c0_110, %c2_111, %c0_112, %c0_113] : memref<1x4x4x256xf32, #tpu.memory_space<vmem>>, vector<1x1x4x256xf32>
    %153 = vector.shape_cast %152 : vector<1x1x4x256xf32> to vector<4x256xf32>
    %154 = vector.shape_cast %151 : vector<4x256xf32> to vector<1x1x4x256xf32>
    tpu.vector_store %arg5[%c0_110, %c2_111, %c0_112, %c0_113], %154 {strides = array<i32>} : memref<1x4x4x256xf32, #tpu.memory_space<vmem>>, vector<1x1x4x256xf32>,
    %155 = vector.broadcast %139 : vector<4x1xf32> to vector<4x256xf32>
    %156 = arith.addf %138, %155 : vector<4x256xf32>
    %c0_114 = arith.constant 0 : index
    %c3_115 = arith.constant 3 : index
    %c0_116 = arith.constant 0 : index
    %c0_117 = arith.constant 0 : index
    %157 = vector.load %arg5[%c0_114, %c3_115, %c0_116, %c0_117] : memref<1x4x4x256xf32, #tpu.memory_space<vmem>>, vector<1x1x4x256xf32>
    %158 = vector.shape_cast %157 : vector<1x1x4x256xf32> to vector<4x256xf32>
    %159 = vector.shape_cast %156 : vector<4x256xf32> to vector<1x1x4x256xf32>
    tpu.vector_store %arg5[%c0_114, %c3_115, %c0_116, %c0_117], %159 {strides = array<i32>} : memref<1x4x4x256xf32, #tpu.memory_space<vmem>>, vector<1x1x4x256xf32>,
    return
  }
  func.func @transform_0(%arg0: i32, %arg1: i32) -> (i32, i32, i32) {
    %c0_i32 = arith.constant 0 : i32
    %c0_i32_0 = arith.constant 0 : i32
    %c0_i32_1 = arith.constant 0 : i32
    return %arg0, %c0_i32, %c0_i32_0 : i32, i32, i32
  }
  func.func @transform_1(%arg0: i32, %arg1: i32) -> (i32, i32, i32, i32) {
    %c0_i32 = arith.constant 0 : i32
    %c0_i32_0 = arith.constant 0 : i32
    %c0_i32_1 = arith.constant 0 : i32
    %c0_i32_2 = arith.constant 0 : i32
    return %c0_i32, %c0_i32_0, %arg1, %c0_i32_1 : i32, i32, i32, i32
  }
  func.func @transform_2(%arg0: i32, %arg1: i32) -> (i32, i32) {
    %c0_i32 = arith.constant 0 : i32
    %c0_i32_0 = arith.constant 0 : i32
    return %arg1, %c0_i32 : i32, i32
  }
  func.func @transform_3(%arg0: i32, %arg1: i32) -> (i32, i32, i32, i32) {
    %c0_i32 = arith.constant 0 : i32
    %c0_i32_0 = arith.constant 0 : i32
    %c0_i32_1 = arith.constant 0 : i32
    return %arg0, %c0_i32, %arg1, %c0_i32_0 : i32, i32, i32, i32
  }
}

</mosaic_0001>

<bundles_post_ra>
// kernel: tpu_custom_call.1
= control target key start
LH: loop header
LB: loop body
LE: loop exit
PB: predicated region body
PF: predicated region fallthrough
CT: control target
= control target key end

     0   :  { %8 = vsyncpa [#allocation3], 0  ;;  %s2071_s0 = inlined_call_operand.hbm [shape: bf16[2,4,256], index: 0, kind: input, shape index: {}]   ;;  %s2072_s1 = inlined_call_operand.hbm [shape: bf16[4,4,4,4], index: 1, kind: input, shape index: {}]   ;;  %s2073_s2 = inlined_call_operand.vmem [shape: f32[4,1], index: 2, kind: input, shape index: {}]   ;;  %s2074_s3 = inlined_call_operand.hbm [shape: f32[2,4,4,256], index: 3, kind: output, shape index: {}]  }
   0x1   :  { %10 = vsyncpa [#allocation3 + $0x1], 0 }
   0x2   :  { %11 = vsyncpa [#allocation6], 0 }
   0x3   :  { %12 = vsyncpa [#allocation4], 0 }
   0x4   :  { %14 = vsyncpa [#allocation4 + $0x1], 0  ;;  %s1707_s12 = smov 0   ;;  %s1709_s13 = smov 0  }
   0x5   :  { %s1711_s14 = smov 0   ;;  %s1713_s15 = smov 0  }
   0x6   :  { %s1715_s16 = smov 0   ;;  %s1717_s17 = smov 0  }
   0x7 LB: > { %s1382_s18 = sadd.s32 4294967295, %s1669_s17   ;;  %s1383_s19 = sadd.s32 4294967294, %s1669_s17   ;;  %s1669_s17 = sphi %s1717_s17, %s20_s17   ;;  %s1665_s16 = sphi %s1715_s16, %s2098_s16   ;;  %s1661_s15 = sphi %s1713_s15, %s2097_s15   ;;  %s1657_s14 = sphi %s1711_s14, %s2096_s14   ;;  %s1653_s13 = sphi %s1709_s13, %s2095_s13   ;;  %s1649_s12 = sphi %s1707_s12, %s2094_s12  }
   0x8   : > { %p52_p0 = scmp.ne.s32.totalorder %s1653_s13, %s1649_s12  ;;  %p1741_p1 = scmp.eq.s32.totalorder %s1382_s18, 0 }
   0x9   : > { %p1745_p2 = scmp.eq.s32.totalorder %s1382_s18, 1  ;;  %p136_p3 = scmp.eq.s32.totalorder %s1383_s19, 1 }
   0xa   : > { %s2079_s20 = scalar_select %p1741_p1, 1, 0 }
   0xb   : > { %s2080_s21 = scalar_select %p1745_p2, 1, 0 }
   0xc   : > { %p1751_p4 = por %p1741_p1, %p52_p0  ;;  %p1384_p5 = scmp.ge.s32.totalorder %s1669_s17, 1 }
   0xd   : > { %p1756_p6 = por %p136_p3, %p52_p0  ;;  %p143_p7 = scmp.lt.s32.totalorder %s1669_s17, 3 }
   0xe   : > { %s2081_s22 = scalar_select %p1751_p4, 1, 0 }
   0xf   : > { %s2082_s23 = scalar_select %p1756_p6, 1, 0 }
  0x10   : > { %p1761_p8 = pnand %p1384_p5, %p143_p7  ;;  %s1671_s25 = smov [#allocation5]  }
  0x11   : > { %s157_s26 = sshll.u32 %s1671_s25, 4  ;;  %s32_s28 = sadd.s32 1, %s1665_s16  ;;  %s158_s26 = int_to_ptr.vmem [resolvable:$true] %s157_s26 }
  0x12   : > { %s2083_s24 = scalar_select %p1761_p8, 1, 0 }
  0x13   : > { %p1446_p9 = pneg %p1761_p8  ;;  %s1525_s4 = scalar_lea.hbm %s2072_s1, 512 }
  0x14   : > { %p1526_p12 = scmp.ne.s32.totalorder %s2072_s1, %s1525_s4  ;;  %p1532_p5 = scmp.lt.u32.totalorder %s1525_s4, %s2072_s1 }
  0x15   : > { %p1770_p11 = pnand %p1446_p9, %p1741_p1 }
  0x17   : > { %p1527_p13 = pneg %p1770_p11 }
  0x19   : > { %p1528_p0 = pnand %p1527_p13, %p1526_p12 }
  0x1b   : > { %p1529_p3 = pneg %p1528_p0 }
  0x1d   : > { %p1534_p7 = pnand %p1532_p5, %p1529_p3 }
  0x1f   : > { %1537 = shalt.err (!%p1534_p7)
}
  0x20   : > { %s1538_s9 = scalar_lea.vmem %s158_s26, 512  ;;  %p1546_p1 = scmp.lt.s32.totalorder %s158_s26, %s158_s26 }
  0x21   : > { %p1539_p9 = scmp.ne.s32.totalorder %s158_s26, %s1538_s9  ;;  %p1547_p4 = scmp.lt.s32.totalorder %s1538_s9, %s1538_s9 }
  0x23   : > { %p1541_p10 = pnand %p1539_p9, %p1527_p13  ;;  %p1548_p8 = por %p1547_p4, %p1546_p1 }
  0x25   : > { %p1542_p6 = pneg %p1541_p10 }
  0x27   : > { %p1549_p2 = pnand %p1548_p8, %p1542_p6 }
  0x29   : > { %1552 = shalt.err (!%p1549_p2)
}
  0x2a   : > { %s1672_s10 = smov 32   ;;  %s1673_s11 = smov 2  }
  0x2b   : > { %1449 = dma.hbm_to_vmem [thread:$0]  (!%p1770_p11), %s2072_s1, 512, %s158_s26, [#allocation6], %s1672_s10, %s1672_s10, %s1673_s11  }
  0x2c   : > { %p34_p1 = scmp.ge.s32.totalorder %s32_s28, 2  ;;  %s39_s25 = sadd.s32 1, %s1657_s14 }
  0x2d   : > { %p46_p2 = scmp.ne.s32.totalorder %s1657_s14, %s1653_s13  ;;  %p47_p4 = scmp.eq.s32.totalorder %s1669_s17, 0 }
  0x2e   : > { %s2100_s28 = smov (%p34_p1, %s32_s28), 0  ;;  %p2086_p8 = scmp.ne.s32.totalorder %s2080_s21, 0 }
  0x2f   : > { %p1797_p6 = por %p47_p4, %p46_p2  ;;  %s36_s27 = ssub.s32 %s1665_s16, %s2100_s28 }
  0x30   : > { %p1803_p10 = por %p2086_p8, %p46_p2  ;;  %p1459_p12 = scmp.lt.s32.totalorder %s1669_s17, 2 }
  0x31   : > { %p37_p11 = scmp.eq.s32.totalorder %s36_s27, 0  ;;  %s178_s26 = sand.u32 1, %s1657_s14  }
  0x32   : > { %s1388_s4 = sshll.u32 %s178_s26, 2  ;;  %s1436_s6 = sshll.u32 %s1665_s16, 6 }
  0x33   : > { %s1812_s5 = scalar_select %p37_p11, %s1657_s14, %s39_s25  }
  0x34   : > { %s1818_s9 = scalar_lea.hbm %s2071_s0, %s1436_s6  ;;  %s182_s21 = scalar_lea.vmem [#allocation2], %s1388_s4 }
  0x35   : > { %s190_s10 = sshll.u32 %s182_s21, 4  ;;  %p1824_p13 = pnand %p1459_p12, %p1797_p6  ;;  %s1820_s10 = int_to_ptr.vmem [resolvable:$true] %s190_s10 }
  0x36   : > { %s179_s18 = scalar_lea.sflag [#allocation3], %s178_s26  ;;  %s1553_s19 = scalar_lea.hbm %s1818_s9, 64 }
  0x37   : > { %p1554_p0 = scmp.ne.s32.totalorder %s1818_s9, %s1553_s19  ;;  %p1555_p3 = pneg %p1824_p13 }
  0x38   : > { %s1558_s4 = scalar_lea.hbm %s2071_s0, 128  ;;  %p1559_p9 = scmp.lt.u32.totalorder %s1818_s9, %s2071_s0 }
  0x39   : > { %p1556_p5 = pnand %p1555_p3, %p1554_p0  ;;  %p1560_p1 = scmp.lt.u32.totalorder %s1558_s4, %s1553_s19 }
  0x3a   : > { %p1562_p4 = scmp.lt.u32.totalorder %s1553_s19, %s1818_s9 }
  0x3b   : > { %p1557_p7 = pneg %p1556_p5  ;;  %p1561_p2 = por %p1560_p1, %p1559_p9 }
  0x3d   : > { %p1563_p6 = por %p1562_p4, %p1561_p2 }
  0x3f   : > { %p1564_p8 = pnand %p1563_p6, %p1557_p7 }
  0x41   : > { %1567 = shalt.err (!%p1564_p8)
}
  0x42   : > { %s1568_s26 = scalar_lea.vmem %s1820_s10, 64  ;;  %s1674_s7 = smov [#allocation2]  }
  0x43   : > { %p1569_p12 = scmp.ne.s32.totalorder %s1820_s10, %s1568_s26  ;;  %s1573_s8 = sshll.u32 %s1674_s7, 4  ;;  %s1574_s8 = int_to_ptr.vmem [resolvable:$false] %s1573_s8 }
  0x44   : > { %s1575_s21 = scalar_lea.vmem %s1574_s8, 128  ;;  %p1576_p5 = scmp.lt.s32.totalorder %s1820_s10, %s1574_s8 }
  0x45   : > { %p1571_p11 = pnand %p1569_p12, %p1555_p3  ;;  %p1577_p9 = scmp.lt.s32.totalorder %s1575_s21, %s1568_s26 }
  0x47   : > { %p1572_p0 = pneg %p1571_p11  ;;  %p1578_p1 = por %p1577_p9, %p1576_p5 }
  0x49   : > { %p1579_p2 = pnand %p1578_p1, %p1572_p0 }
  0x4b   : > { %1582 = shalt.err (!%p1579_p2)
}
  0x4c   : > { %1453 = dma.hbm_to_vmem [thread:$0]  (!%p1824_p13), %s1818_s9, 64, %s1820_s10, %s179_s18  }
  0x4d   : > { %p2089_p7 = scmp.ne.s32.totalorder %s2083_s24, 0 }
  0x4e   : > { %s1856_s19 = sand.u32 (!%p2089_p7), 1, %s1653_s13   ;;  %p2090_p3 = scmp.ne.s32.totalorder (!%p2089_p7), %s2081_s22, 0 }
  0x4f   : > { %199 = sbr.rel (%p2089_p7) target bundleno = 509 (0x1fd), region = 32  ;;  %s1392_s25 = sshll.u32 (!%p2089_p7), %s1856_s19, 2 }
  0x50   : > { %s202_s27 = scalar_lea.sflag (!%p2089_p7), [#allocation3], %s1856_s19  ;;  %s205_s4 = scalar_lea.vmem (!%p2089_p7), [#allocation2], %s1392_s25 }
  0x56   : > { %1636 = dma.done.wait (%p2090_p3), %s202_s27, 64  }
  0x57   : > { %1638 = vsyncadd (%p2090_p3), %s202_s27, 4294967232  ;;  %p2091_p4 = scmp.ne.s32.totalorder %s2079_s20, 0 }
  0x59   : > { %1640 = dma.done.wait (%p2091_p4), [#allocation6], 512  }
  0x5a   : > { %1642 = vsyncadd (%p2091_p4), [#allocation6], 4294966784  ;;  %v1675_v0 = vmov 0   ;;  %s1676_s24 = smov 17   ;;  %s1677_s22 = smov 16   ;;  %v244_v4 = vlaneseq  ;;  %vm288_vm6 = vcmask 138240  }
  0x5b   : > { %368 = vmatprep.mubr.bf16.mxu0 %v1675_v0  ;;  %418 = vmatprep.mubr.bf16.mxu1 %v1675_v0  ;;  %v1871_v1 = vld.sshfl [vmem:[%s205_s4] sm:$0x33 pattern:$0x76325410]  ;;  %s1678_s20 = smov 15   ;;  %s1679_s9 = smov 1  }
  0x5c   : > { %1524 = vset.pattern.permute.xlu0 %v1675_v0  ;;  %284 = vrot.lane.b32.xlu1 %v1871_v1, %s1676_s24  ;;  %v1876_v2 = vcombine.high %v1871_v1, %v1871_v1  ;;  %s1680_s10 = smov 127   ;;  %s1681_s11 = smov 113   ;;  %v1218_v3 = vld [vmem:[%s2073_s2] sm:$0xf]  ;;  %v245_v5 = vand.u32 127, %v244_v4  ;;  %v303_v9 = vshrl.u32 %v244_v4, 7 }
  0x5d   : > { %315 = vrot.lane.b32.xlu0 %v1871_v1, %s1677_s22  ;;  %s1682_s18 = smov 112   ;;  %s1683_s29 = smov 111   ;;  %vm319_vm7 = vcmask 130048   ;;  %vm330_vm9 = vcmask 1041408   ;;  %vm433_vm11 = vcmask 121856   ;;  %vm326_vm14 = vcmask 31744  }
  0x5e   : > { %v246_v6 = vadd.s32 128, %v245_v5  ;;  %v251_v7 = vand.u32 15, %v245_v5  ;;  %v304_v10 = vsub.s32 0, %v303_v9  ;;  %v308_v12 = vsub.s32 4, %v303_v9  ;;  %v325_v30 = vld [vmem:[#allocation5 + $0x2] sm:$0x3] }
  0x5f   : > { %v314_v33 = vld [vmem:[#allocation5] sm:$0x3]  ;;  %vm558_vm15 = vcmask 7168   ;;  %v459_v45 = vld [vmem:[#allocation5 + $0xa] sm:$0x3]  ;;  %v629_v48 = vsel %vm330_vm9, %v1871_v1, 0 }
  0x60   : > { %286 = vrot.lane.b32.xlu1 %v1876_v2, %s1676_s24  ;;  %v258_v8 = vand.u32 15, %v246_v6  ;;  %vm271_vm0 = vcmp.gt.s32.totalorder %v251_v7, 0  ;;  %vm273_vm3 = vcmp.lt.s32.totalorder %v251_v7, 15  ;;  %v428_v46 = vld [vmem:[#allocation5 + $0x8] sm:$0x3]  ;;  %s1394_s7 = sshll.u32 %s1856_s19, 5 }
  0x61   : > { %317 = vrot.lane.b32.xlu0 %v1876_v2, %s1677_s22  ;;  %v568_v50 = vld [vmem:[#allocation5 + $0x4] sm:$0x3]  ;;  %v624_v51 = vld [vmem:[#allocation5 + $0x6] sm:$0x3]  ;;  %v678_v57 = vld [vmem:[#allocation5 + $0xc] sm:$0x3] }
  0x62   : > { %vm272_vm1 = vcmp.gt.s32.totalorder %v258_v8, 0  ;;  %vm274_vm4 = vcmp.lt.s32.totalorder %v258_v8, 15  ;;  %v726_v58 = vld [vmem:[#allocation5 + $0x12] sm:$0x3]  ;;  %v622_v62 = vld [vmem:[#allocation5 + $0x10] sm:$0x3] }
  0x63   : > { %vm300_vm2 = vmpackc.low %vm272_vm1, %vm271_vm0  ;;  %vm821_vm0 = vcmask 1039360   ;;  %vm978_vm1 = vcmask 924672   ;;  %s2003_s8 = scalar_lea.vmem [#allocation7], %s1394_s7  ;;  %s1437_s25 = sshll.u32 %s1661_s15, 9 }
  0x64   : > { %431 = vrot.lane.b32.xlu1 %v1876_v2, %s1678_s20  ;;  %v301_v11 = vsel %vm300_vm2, 65537, %v1675_v0  ;;  %vm444_vm5 = vmpackc.low %vm274_vm4, %vm273_vm3  ;;  %vm1045_vm2 = vcmask 916480   ;;  %vm1155_vm3 = vcmask 908288   ;;  %s1271_s21 = sshll.u32 %s2003_s8, 4  ;;  %s2021_s24 = scalar_lea.hbm %s2074_s3, %s1437_s25  ;;  %s2015_s21 = int_to_ptr.vmem [resolvable:$true] %s1271_s21 }
  0x65   : > { %429 = vrot.lane.b32.xlu0 %v1871_v1, %s1678_s20  ;;  %v1897_v13 = vrot.slane %v301_v11, %v304_v10  ;;  %v1899_v14 = vrot.slane %v301_v11, %v308_v12  ;;  %v445_v17 = vsel %vm444_vm5, 65537, %v1675_v0  ;;  %v816_v11 = vld [vmem:[#allocation5 + $0x18] sm:$0x3]  ;;  %s1256_s22 = scalar_lea.sflag [#allocation4], %s1856_s19  ;;  %s1583_s20 = scalar_lea.vmem %s2015_s21, 512 }
  0x66   : > { %v1905_v20 = vrot.slane %v445_v17, %v304_v10  ;;  %v1907_v21 = vrot.slane %v445_v17, %v308_v12  ;;  %v885_v10 = vld [vmem:[#allocation5 + $0x1a] sm:$0x3]  ;;  %p1584_p13 = scmp.ne.s32.totalorder %s2015_s21, %s1583_s20  ;;  %s1684_s15 = smov [#allocation7]  }
  0x67   : > { %vm310_vm8 = vcmp.ne.s16.totalorder %v1897_v13, 0  ;;  %vm311_vm10 = vcmp.ne.s16.totalorder %v1899_v14, 0 }
  0x68   : > { %556 = vrot.lane.b32.xlu1 %v1876_v2, %s1679_s9  ;;  %vm454_vm12 = vcmp.ne.s16.totalorder %v1905_v20, 0  ;;  %vm455_vm13 = vcmp.ne.s16.totalorder %v1907_v21, 0  ;;  %v1104_v21 = vld [vmem:[#allocation5 + $0x1c] sm:$0x3]  ;;  %p1585_p6 = pnand %p1584_p13, %p1803_p10 }
  0x69   : > { %554 = vrot.lane.b32.xlu0 %v1871_v1, %s1679_s9  ;;  %s1587_s9 = sshll.u32 %s1684_s15, 4  ;;  %s1588_s9 = int_to_ptr.vmem [resolvable:$false] %s1587_s9 }
  0x6a   : > { %p1586_p8 = pneg %p1585_p6  ;;  %p1590_p12 = scmp.lt.s32.totalorder %s2015_s21, %s1588_s9 }
  0x6c   : > { %819 = vrot.lane.b32.xlu1 %v1876_v2, %s1680_s10 }
  0x6d   : > { %817 = vrot.lane.b32.xlu0 %v1871_v1, %s1680_s10  ;;  %s1589_s10 = scalar_lea.vmem %s1588_s9, 1024 }
  0x6e   : > { %p1591_p11 = scmp.lt.s32.totalorder %s1589_s10, %s1583_s20 }
  0x70   : > { %976 = vrot.lane.b32.xlu1 %v1876_v2, %s1681_s11  ;;  %p1592_p0 = por %p1591_p11, %p1590_p12 }
  0x71   : > { %974 = vrot.lane.b32.xlu0 %v1871_v1, %s1681_s11 }
  0x72   : > { %p1593_p5 = pnand %p1592_p0, %p1586_p8 }
  0x74   : > { %1043 = vrot.lane.b32.xlu1 %v1876_v2, %s1682_s18 }
  0x75   : > { %1041 = vrot.lane.b32.xlu0 %v1871_v1, %s1682_s18 }
  0x78   : > { %1153 = vrot.lane.b32.xlu1 %v1876_v2, %s1683_s29 }
  0x79   : > { %1151 = vrot.lane.b32.xlu0 %v1871_v1, %s1683_s29  ;;  %v831_v1 = vld [vmem:[#allocation5 + $0xe] sm:$0x3] }
  0x7d   : > { %1221 = vperm.xlu0 %1524, %v1218_v3  }
  0xce   : > { %v285_v15 = vpop.permute.xlu1 %284 }
  0xcf   : > { %v316_v16 = vpop.permute.xlu0 %315  ;;  %v294_v18 = vsel %vm288_vm6, 0, %v285_v15 }
  0xd0   : > { %v323_v19 = vsel %vm319_vm7, 0, %v316_v16  ;;  %v312_v24 = vsel %vm310_vm8, %v294_v18, 0 }
  0xd1   : > { %v331_v27 = vsel %vm330_vm9, %v323_v19, 0  ;;  %v381_v29 = vsel %vm330_vm9, %v312_v24, 0  ;;  %v988_v19 = vld [vmem:[#allocation5 + $0x14] sm:$0x3]  ;;  %v1165_v24 = vld [vmem:[#allocation5 + $0x1e] sm:$0x3] }
  0xd2   : > { %v287_v22 = vpop.permute.xlu1 %286 }
  0xd3   : > { %v318_v23 = vpop.permute.xlu0 %317  ;;  %v289_v26 = vsel %vm288_vm6, %v285_v15, %v287_v22  ;;  %v1051_v22 = vld [vmem:[#allocation5 + $0x16] sm:$0x3] }
  0xd4   : > { %v320_v25 = vsel %vm319_vm7, %v316_v16, %v318_v23  ;;  %v313_v28 = vsel %vm311_vm10, %v289_v26, 0 }
  0xd5   : > { %1396 = vmatprep.subr.msk.bf16.mxu0 %vm330_vm9, %v320_v25  ;;  %1398 = vmatprep.subr.msk.bf16.mxu1 %vm330_vm9, %v313_v28 }
  0xd6   : > { %337 = vmatpush1.bf16.msra.mxu0 %v331_v27  ;;  %387 = vmatpush1.bf16.msra.mxu1 %v381_v29  ;;  %v432_v31 = vpop.permute.xlu1 %431 }
  0xd7   : > { %v430_v32 = vpop.permute.xlu0 %429  ;;  %1402 = vmatprep.subr.msk.bf16.mxu1 %vm330_vm9, %v320_v25 }
  0xd8   : > { %v434_v34 = vsel %vm433_vm11, %v430_v32, %v432_v31  ;;  %v438_v35 = vsel %vm433_vm11, 0, %v430_v32 }
  0xd9   : > { %v456_v36 = vsel %vm454_vm12, %v438_v35, 0  ;;  %v457_v37 = vsel %vm455_vm13, %v434_v34, 0  ;;  %1397 = vmatmul.mubr.msk.bf16.vlgmr.msra.gmra.mrb[0].mxu0 %vm326_vm14, %v325_v30  ;;  %1399 = vmatmul.mubr.msk.bf16.vlgmr.msra.gmra.mrb[0].mxu1 %vm326_vm14, %v314_v33 }
  0xda   : > { %1400 = vmatprep.subr.msk.bf16.mxu0 %vm330_vm9, %v457_v37  ;;  %v464_v38 = vsel %vm330_vm9, %v456_v36, 0  ;;  %514 = vmatpush1.bf16.msra.mxu1 %v331_v27  ;;  %v557_v39 = vpop.permute.xlu1 %556 }
  0xdb   : > { %470 = vmatpush1.bf16.msra.mxu0 %v464_v38  ;;  %v555_v40 = vpop.permute.xlu0 %554  ;;  %501 = vmatprep.mubr.bf16.mxu0 %v1675_v0 }
  0xdc   : > { %v559_v41 = vsel %vm558_vm15, %v555_v40, %v557_v39  ;;  %v563_v42 = vsel %vm558_vm15, 0, %v555_v40  ;;  %545 = vmatprep.mubr.bf16.mxu1 %v1675_v0  ;;  %1406 = vmatprep.subr.msk.bf16.mxu1 %vm330_vm9, %v1876_v2 }
  0xdd   : > { %v565_v43 = vsel %vm310_vm8, %v563_v42, 0  ;;  %v566_v44 = vsel %vm311_vm10, %v559_v41, 0 }
  0xde   : > { %1404 = vmatprep.subr.msk.bf16.mxu0 %vm330_vm9, %v566_v44  ;;  %v573_v47 = vsel %vm330_vm9, %v565_v43, 0  ;;  %v820_v49 = vpop.permute.xlu1 %819 }
  0xdf   : > { %v826_v52 = vsel %vm821_vm0, %v820_v49, 0  ;;  %v818_v53 = vpop.permute.xlu0 %817 }
  0xe0   : > { %v829_v54 = vsel %vm455_vm13, %v826_v52, 0  ;;  %v822_v55 = vsel %vm821_vm0, %v818_v53, %v820_v49 }
  0xe1   : > { %1401 = vmatmul.mubr.msk.bf16.vlgmr.msra.gmra.mrb[4].mxu0 %vm326_vm14, %v459_v45  ;;  %1403 = vmatmul.mubr.msk.bf16.vlgmr.msra.gmra.mrb[4].mxu1 %vm326_vm14, %v428_v46  ;;  %v828_v56 = vsel %vm454_vm12, %v822_v55, 0 }
  0xe2   : > { %579 = vmatpush1.bf16.msra.mxu0 %v573_v47  ;;  %635 = vmatpush1.bf16.msra.mxu1 %v629_v48  ;;  %v836_v59 = vsel %vm330_vm9, %v828_v56, 0  ;;  %v977_v60 = vpop.permute.xlu1 %976 }
  0xe3   : > { %610 = vmatprep.mubr.bf16.mxu0 %v1675_v0  ;;  %1408 = vmatprep.subr.msk.bf16.mxu0 %vm330_vm9, %v1876_v2  ;;  %v975_v61 = vpop.permute.xlu0 %974  ;;  %v983_v63 = vsel %vm978_vm1, %v977_v60, 0 }
  0xe4   : > { %666 = vmatprep.mubr.bf16.mxu1 %v1675_v0  ;;  %1410 = vmatprep.subr.msk.bf16.mxu1 %vm330_vm9, %v1876_v2  ;;  %v986_v4 = vsel %vm311_vm10, %v983_v63, 0  ;;  %v979_v5 = vsel %vm978_vm1, %v975_v61, %v977_v60 }
  0xe6   : > { %v1044_v3 = vpop.permute.xlu1 %1043 }
  0xe7   : > { %v1049_v6 = vsel %vm1045_vm2, %v1044_v3, 0  ;;  %v1042_v7 = vpop.permute.xlu0 %1041 }
  0xe8   : > { %v1046_v9 = vsel %vm1045_vm2, %v1042_v7, %v1044_v3 }
  0xe9   : > { %1405 = vmatmul.mubr.msk.bf16.vlgmr.msra.gmra.mrb[8].mxu0 %vm326_vm14, %v568_v50  ;;  %1407 = vmatmul.mubr.msk.bf16.vlgmr.msra.gmra.mrb[8].mxu1 %vm326_vm14, %v624_v51  ;;  %v1056_v16 = vsel %vm330_vm9, %v1046_v9, 0 }
  0xea   : > { %683 = vmatpush1.bf16.msra.mxu0 %v629_v48  ;;  %731 = vmatpush1.bf16.msra.mxu1 %v629_v48  ;;  %v1154_v8 = vpop.permute.xlu1 %1153 }
  0xeb   : > { %1412 = vmatprep.subr.msk.bf16.mxu0 %vm330_vm9, %v566_v44  ;;  %714 = vmatprep.mubr.bf16.mxu0 %v1675_v0  ;;  %v1160_v14 = vsel %vm1155_vm3, %v1154_v8, 0  ;;  %v1152_v15 = vpop.permute.xlu0 %1151 }
  0xec   : > { %762 = vmatprep.mubr.bf16.mxu1 %v1675_v0  ;;  %1414 = vmatprep.subr.msk.bf16.mxu1 %vm330_vm9, %v829_v54  ;;  %v1163_v13 = vsel %vm455_vm13, %v1160_v14, 0  ;;  %v1156_v17 = vsel %vm1155_vm3, %v1152_v15, %v1154_v8 }
  0xed   : > { %v1162_v18 = vsel %vm454_vm12, %v1156_v17, 0 }
  0xee   : > { %v1170_v23 = vsel %vm330_vm9, %v1162_v18, 0 }
  0xf1   : > { %1409 = vmatmul.mubr.msk.bf16.vlgmr.msra.gmra.mrb[12].mxu0 %vm326_vm14, %v678_v57  ;;  %1411 = vmatmul.mubr.msk.bf16.vlgmr.msra.gmra.mrb[12].mxu1 %vm326_vm14, %v726_v58 }
  0xf2   : > { %775 = vmatpush1.bf16.msra.mxu0 %v573_v47  ;;  %842 = vmatpush1.bf16.msra.mxu1 %v836_v59 }
  0xf3   : > { %1416 = vmatprep.subr.msk.bf16.mxu0 %vm330_vm9, %v829_v54  ;;  %806 = vmatprep.mubr.bf16.mxu0 %v1675_v0 }
  0xf4   : > { %873 = vmatprep.mubr.bf16.mxu1 %v1675_v0  ;;  %1418 = vmatprep.subr.msk.bf16.mxu1 %vm330_vm9, %v1876_v2  ;;  %v985_v2 = vsel %vm310_vm8, %v979_v5, 0 }
  0xf5   : > { %v993_v12 = vsel %vm330_vm9, %v985_v2, 0 }
  0xf9   : > { %1413 = vmatmul.mubr.msk.bf16.vlgmr.msra.gmra.mrb[16].mxu0 %vm326_vm14, %v622_v62  ;;  %1415 = vmatmul.mubr.msk.bf16.vlgmr.msra.gmra.mrb[16].mxu1 %vm326_vm14, %v831_v1 }
  0xfa   : > { %890 = vmatpush1.bf16.msra.mxu0 %v836_v59  ;;  %934 = vmatpush1.bf16.msra.mxu1 %v629_v48 }
  0xfb   : > { %921 = vmatprep.mubr.bf16.mxu0 %v1675_v0  ;;  %965 = vmatprep.mubr.bf16.mxu1 %v1675_v0 }
  0xfc   : > { %1420 = vmatprep.subr.msk.bf16.mxu0 %vm330_vm9, %v986_v4  ;;  %1422 = vmatprep.subr.msk.bf16.mxu1 %vm330_vm9, %v1049_v6  ;;  %v1998_v44 = vpop.permute.xlu0 %1221 }
 0x101   : > { %1417 = vmatmul.mubr.msk.bf16.vlgmr.msra.gmra.mrb[20].mxu0 %vm326_vm14, %v885_v10  ;;  %1419 = vmatmul.mubr.msk.bf16.vlgmr.msra.gmra.mrb[20].mxu1 %vm326_vm14, %v816_v11 }
 0x102   : > { %999 = vmatpush1.bf16.msra.mxu0 %v993_v12  ;;  %1061 = vmatpush1.bf16.msra.mxu1 %v1056_v16 }
 0x103   : > { %1424 = vmatprep.subr.msk.bf16.mxu0 %vm330_vm9, %v1049_v6  ;;  %1030 = vmatprep.mubr.bf16.mxu0 %v1675_v0 }
 0x104   : > { %1092 = vmatprep.mubr.bf16.mxu1 %v1675_v0  ;;  %1426 = vmatprep.subr.msk.bf16.mxu1 %vm330_vm9, %v1163_v13 }
 0x109   : > { %1421 = vmatmul.mubr.msk.bf16.vlgmr.msra.gmra.mrb[24].mxu0 %vm326_vm14, %v988_v19  ;;  %1423 = vmatmul.mubr.msk.bf16.vlgmr.msra.gmra.mrb[24].mxu1 %vm326_vm14, %v1051_v22 }
 0x10a   : > { %1109 = vmatpush1.bf16.msra.mxu0 %v1056_v16  ;;  %1176 = vmatpush1.bf16.msra.mxu1 %v1170_v23 }
 0x10b   : > { %1140 = vmatprep.mubr.bf16.mxu0 %v1675_v0  ;;  %1207 = vmatprep.mubr.bf16.mxu1 %v1675_v0 }
 0x111   : > { %1425 = vmatmul.mubr.msk.bf16.vlgmr.msra.gmra.mrb[28].mxu0 %vm326_vm14, %v1104_v21  ;;  %1427 = vmatmul.mubr.msk.bf16.vlgmr.msra.gmra.mrb[28].mxu1 %vm326_vm14, %v1165_v24 }
 0x1ac   : > { %v370_v20 = vpop.f32.mrb[0].mxu0  ;;  %v420_v26 = vpop.f32.mrb[0].mxu1 }
 0x1ad   : > { %v372_v25 = vpop.f32.mrb[1].mxu0  ;;  %v421_v27 = vadd.f32 %v420_v26, %v370_v20  ;;  %v422_v29 = vpop.f32.mrb[1].mxu1 }
 0x1ae   : > { %v374_v28 = vpop.f32.mrb[2].mxu0  ;;  %v423_v30 = vadd.f32 %v422_v29, %v372_v25  ;;  %v424_v32 = vpop.f32.mrb[2].mxu1 }
 0x1af   : > { %v375_v31 = vpop.f32.mrb[3].mxu0  ;;  %v425_v33 = vpop.f32.mrb[3].mxu1 }
 0x1b4   : > { %v503_v34 = vpop.f32.mrb[4].mxu0  ;;  %v547_v36 = vpop.f32.mrb[4].mxu1 }
 0x1b5   : > { %v505_v35 = vpop.f32.mrb[5].mxu0  ;;  %v548_v0 = vadd.f32 %v547_v36, %v503_v34  ;;  %v549_v38 = vpop.f32.mrb[5].mxu1 }
 0x1b6   : > { %v507_v37 = vpop.f32.mrb[6].mxu0  ;;  %v550_v39 = vadd.f32 %v549_v38, %v505_v35  ;;  %v551_v41 = vpop.f32.mrb[6].mxu1 }
 0x1b7   : > { %v508_v40 = vpop.f32.mrb[7].mxu0  ;;  %v552_v42 = vpop.f32.mrb[7].mxu1 }
 0x1bc   : > { %v612_v43 = vpop.f32.mrb[8].mxu0  ;;  %v668_v47 = vpop.f32.mrb[8].mxu1 }
 0x1bd   : > { %v619_v45 = vadd.f32 %v612_v43, %v421_v27  ;;  %v614_v46 = vpop.f32.mrb[9].mxu0  ;;  %v670_v50 = vpop.f32.mrb[9].mxu1 }
 0x1be   : > { %v620_v48 = vadd.f32 %v614_v46, %v423_v30  ;;  %v616_v49 = vpop.f32.mrb[10].mxu0  ;;  %v672_v53 = vpop.f32.mrb[10].mxu1 }
 0x1bf   : > { %v675_v51 = vadd.f32 %v668_v47, %v619_v45  ;;  %v617_v52 = vpop.f32.mrb[11].mxu0  ;;  %v673_v55 = vpop.f32.mrb[11].mxu1 }
 0x1c0   : > { %v676_v54 = vadd.f32 %v670_v50, %v620_v48 }
 0x1c1   : > { %v1224_v56 = vadd.f32 %v1998_v44, %v675_v51 }
 0x1c2   : > { %v1225_v57 = vadd.f32 %v1998_v44, %v676_v54 }
 0x1c4   : > { %v1228_v58 = vcombine.low %v1224_v56, %v1225_v57  ;;  %v716_v59 = vpop.f32.mrb[12].mxu0  ;;  %v764_v62 = vpop.f32.mrb[12].mxu1 }
 0x1c5   : > { %v723_v60 = vadd.f32 %v716_v59, %v548_v0  ;;  %v718_v61 = vpop.f32.mrb[13].mxu0  ;;  %v766_v3 = vpop.f32.mrb[13].mxu1 }
 0x1c6   : > { %v724_v63 = vadd.f32 %v718_v61, %v550_v39  ;;  %v720_v1 = vpop.f32.mrb[14].mxu0  ;;  %1230 = vst [vmem:[%s2003_s8] sm:$0xff] %v1228_v58  ;;  %v768_v5 = vpop.f32.mrb[14].mxu1 }
 0x1c7   : > { %v721_v4 = vpop.f32.mrb[15].mxu0  ;;  %v769_v6 = vpop.f32.mrb[15].mxu1 }
 0x1cc   : > { %v808_v7 = vpop.f32.mrb[16].mxu0  ;;  %v875_v9 = vpop.f32.mrb[16].mxu1 }
 0x1cd   : > { %v809_v2 = vadd.f32 %v808_v7, %v764_v62  ;;  %v810_v8 = vpop.f32.mrb[17].mxu0  ;;  %v882_v11 = vadd.f32 %v875_v9, %v723_v60  ;;  %v877_v14 = vpop.f32.mrb[17].mxu1 }
 0x1ce   : > { %v811_v10 = vadd.f32 %v810_v8, %v766_v3  ;;  %v812_v12 = vpop.f32.mrb[18].mxu0  ;;  %v883_v15 = vadd.f32 %v877_v14, %v724_v63  ;;  %v879_v13 = vpop.f32.mrb[18].mxu1 }
 0x1cf   : > { %v813_v16 = vpop.f32.mrb[19].mxu0  ;;  %v1231_v17 = vadd.f32 %v1998_v44, %v882_v11  ;;  %v880_v18 = vpop.f32.mrb[19].mxu1 }
 0x1d0   : > { %v1232_v19 = vadd.f32 %v1998_v44, %v883_v15 }
 0x1d2   : > { %v1235_v22 = vcombine.low %v1231_v17, %v1232_v19 }
 0x1d4   : > { %v923_v23 = vpop.f32.mrb[20].mxu0  ;;  %1428 = vst [vmem:[%s2003_s8 + $0x8] sm:$0xff] %v1235_v22  ;;  %v967_v24 = vpop.f32.mrb[20].mxu1 }
 0x1d5   : > { %v925_v21 = vpop.f32.mrb[21].mxu0  ;;  %v968_v20 = vadd.f32 %v967_v24, %v923_v23  ;;  %v969_v26 = vpop.f32.mrb[21].mxu1 }
 0x1d6   : > { %v927_v25 = vpop.f32.mrb[22].mxu0  ;;  %v970_v27 = vadd.f32 %v969_v26, %v925_v21  ;;  %v971_v29 = vpop.f32.mrb[22].mxu1 }
 0x1d7   : > { %v928_v28 = vpop.f32.mrb[23].mxu0  ;;  %v972_v30 = vpop.f32.mrb[23].mxu1 }
 0x1dc   : > { %v1032_v31 = vpop.f32.mrb[24].mxu0  ;;  %v1094_v34 = vpop.f32.mrb[24].mxu1 }
 0x1dd   : > { %v1039_v32 = vadd.f32 %v1032_v31, %v809_v2  ;;  %v1034_v33 = vpop.f32.mrb[25].mxu0  ;;  %v1096_v0 = vpop.f32.mrb[25].mxu1 }
 0x1de   : > { %v1040_v35 = vadd.f32 %v1034_v33, %v811_v10  ;;  %v1036_v36 = vpop.f32.mrb[26].mxu0  ;;  %v1098_v39 = vpop.f32.mrb[26].mxu1 }
 0x1df   : > { %v1101_v37 = vadd.f32 %v1094_v34, %v1039_v32  ;;  %v1037_v38 = vpop.f32.mrb[27].mxu0  ;;  %v1099_v41 = vpop.f32.mrb[27].mxu1 }
 0x1e0   : > { %v1102_v40 = vadd.f32 %v1096_v0, %v1040_v35 }
 0x1e1   : > { %v1239_v42 = vadd.f32 %v1998_v44, %v1101_v37 }
 0x1e2   : > { %v1240_v43 = vadd.f32 %v1998_v44, %v1102_v40 }
 0x1e4   : > { %v1243_v45 = vcombine.low %v1239_v42, %v1240_v43  ;;  %v1142_v46 = vpop.f32.mrb[28].mxu0  ;;  %v1209_v49 = vpop.f32.mrb[28].mxu1 }
 0x1e5   : > { %v1149_v47 = vadd.f32 %v1142_v46, %v968_v20  ;;  %v1144_v48 = vpop.f32.mrb[29].mxu0  ;;  %v1211_v52 = vpop.f32.mrb[29].mxu1 }
 0x1e6   : > { %1429 = vst [vmem:[%s2003_s8 + $0x10] sm:$0xff] %v1243_v45  ;;  %v1150_v50 = vadd.f32 %v1144_v48, %v970_v27  ;;  %v1146_v51 = vpop.f32.mrb[30].mxu0  ;;  %v1213_v55 = vpop.f32.mrb[30].mxu1 }
 0x1e7   : > { %v1216_v53 = vadd.f32 %v1209_v49, %v1149_v47  ;;  %v1147_v54 = vpop.f32.mrb[31].mxu0  ;;  %v1214_v57 = vpop.f32.mrb[31].mxu1 }
 0x1e8   : > { %v1217_v56 = vadd.f32 %v1211_v52, %v1150_v50 }
 0x1e9   : > { %v1247_v58 = vadd.f32 %v1998_v44, %v1216_v53 }
 0x1ea   : > { %v1248_v59 = vadd.f32 %v1998_v44, %v1217_v56 }
 0x1ec   : > { %v1251_v60 = vcombine.low %v1247_v58, %v1248_v59 }
 0x1ee   : > { %1430 = vst [vmem:[%s2003_s8 + $0x18] sm:$0xff] %v1251_v60 }
 0x1ef   : > { %1596 = shalt.err (!%p1593_p5)
}
 0x1f0   : > { %s1597_s11 = scalar_lea.hbm %s2021_s24, 512  ;;  %s1601_s6 = scalar_lea.hbm %s2074_s3, 1024 }
 0x1f1   : > { %p1598_p9 = scmp.ne.s32.totalorder %s2021_s24, %s1597_s11  ;;  %p1602_p7 = scmp.lt.u32.totalorder %s2021_s24, %s2074_s3 }
 0x1f2   : > { %p1603_p3 = scmp.lt.u32.totalorder %s1601_s6, %s1597_s11  ;;  %p1605_p13 = scmp.lt.u32.totalorder %s1597_s11, %s2021_s24 }
 0x1f3   : > { %p1599_p1 = pnand %p1598_p9, %p1803_p10 }
 0x1f4   : > { %p1604_p4 = por %p1603_p3, %p1602_p7 }
 0x1f5   : > { %p1600_p2 = pneg %p1599_p1 }
 0x1f6   : > { %p1606_p6 = por %p1605_p13, %p1604_p4 }
 0x1f8   : > { %p1607_p8 = pnand %p1606_p6, %p1600_p2 }
 0x1fa   : > { %1610 = shalt.err (!%p1607_p8)
}
 0x1fb   : > { %s1685_s8 = smov 128   ;;  %s1686_s25 = smov 8  }
 0x1fc   : > { %1444 = dma.vmem_to_hbm [thread:$0]  (%p1803_p10), %s2015_s21, 512, %s2021_s24, %s1256_s22, %s1685_s8, %s1685_s8, %s1686_s25  }
 0x1fd PF: > { %s1286_s27 = sand.u32 1, %s1649_s12   ;;  %p2092_p12 = scmp.ne.s32.totalorder %s2082_s23, 0 }
 0x1fe   : > { %p2093_p11 = scmp.ge.s32.totalorder %s1669_s17, 2  ;;  %s1287_s4 = scalar_lea.sflag [#allocation4], %s1286_s27 }
 0x200   : > { %p1455_p0 = pnand %p2093_p11, %p2092_p12 }
 0x202   : > { %1644 = dma.done.wait (!%p1455_p0), %s1287_s4, 512  }
 0x203   : > { %1646 = vsyncadd (!%p1455_p0), %s1287_s4, 4294966784  ;;  %s20_s17 = sadd.s32 1, %s1669_s17   ;;  %s2094_s12 = smov %s1653_s13 }
 0x204   : > { %p17_p5 = scmp.ge.s32.totalorder %s20_s17, 4   ;;  %s2095_s13 = smov %s1657_s14 }
 0x205   : > { %s2096_s14 = smov %s1812_s5  ;;  %s2097_s15 = smov %s1665_s16 }
 0x206   : > { %s2098_s16 = smov %s2100_s28  ;;  %19 = sbr.rel (!%p17_p5) target bundleno = 7 (0x7), region = 103 }
 0x20d   :  { %1292 = vsyncpa [#allocation3], 1 }
 0x20e   :  { %1294 = vsyncpa [#allocation3 + $0x1], 1 }
 0x20f   :  { %1295 = vsyncpa [#allocation6], 1 }
 0x210   :  { %1296 = vsyncpa [#allocation4], 1 }
 0x211   :  { %1298 = vsyncpa [#allocation4 + $0x1], 1 }

</bundles_post_ra>
